<compile_context>
chip_gen: v5e
topology: v5e:2x2
jax: 0.10.0
libtpu: 0.0.40
codegen_flags: <defaults>
</compile_context>

<pallas_src>
import functools
import math

import jax
import jax.numpy as jnp
from jax.experimental import pallas as pl
from jax.experimental.pallas import tpu as pltpu


# ----------------------------- helpers ------------------------------------ #

def _layernorm(x, g, b, eps):
    mu = jnp.mean(x, axis=-1, keepdims=True)
    var = jnp.mean((x - mu) * (x - mu), axis=-1, keepdims=True)
    return (x - mu) * jax.lax.rsqrt(var + eps) * g + b


def _vmem_limit_bytes():
    """Generation-aware scoped-VMEM limit (v5e/v6e: 128 MiB, v7x: 64 MiB)."""
    cap = 64 << 20
    try:
        info = pltpu.get_tpu_info()
        cap = int(getattr(info, 'vmem_capacity_bytes', cap)) or cap
    except Exception:
        pass
    return int(cap * 0.8)          # ~20% headroom for compiler-internal scratch


def _choose_batch_block(n, l, e, e1, d, f, p1, nhead, compute_itemsize,
                        vmem_budget):
    """Largest divisor bn of n giving >= 2 parallel blocks (both v7x
    TensorCores busy) whose estimated VMEM footprint fits the budget."""
    ci = compute_itemsize
    vmax = max(e, f)
    # layer/batch-invariant pe block + in-kernel bias + double-buffered
    # per-layer weights + packed vectors.
    fixed = (l * l * p1 * ci
             + l * l * nhead * 4
             + 2 * ci * (3 * e * d + d * e + e * f + e1 * f + f * e + p1 * nhead)
             + 2 * 4 * 8 * vmax)

    def need(bn):
        io = 2 * bn * l * (e * 4 + e1 * ci) + 2 * bn * l * e * 4   # s, e_aa, out
        interm = bn * l * (4 * d * 4 + f * 4 + 4 * e * 4)          # q,k,v,ctx,hid,...
        logits = 3 * bn * l * l * 4                                # one head live
        return fixed + io + interm + logits

    bn = n if n < 2 else n // 2
    while bn > 1 and (n % bn != 0 or need(bn) > vmem_budget):
        bn -= 1
    return max(bn, 1)


# --------------------------- row-tiled 2-layer MLP -------------------------- #

def mlp2_kernel(x_ref, w1_ref, b1_ref, w2_ref, b2_ref, o_ref, *, cd):
    x = x_ref[...].astype(cd)
    h = jnp.dot(x, w1_ref[...].astype(cd), preferred_element_type=jnp.float32)
    h = jnp.maximum(h + b1_ref[...], 0.0)
    o = (jnp.dot(h.astype(cd), w2_ref[...].astype(cd),
                 preferred_element_type=jnp.float32) + b2_ref[...])
    o_ref[...] = o.astype(o_ref.dtype)


def mlp2(x, w1, b1, w2, b2, block_rows=2048, compute_dtype=jnp.float32):
    m, kin = x.shape
    hid = w1.shape[1]
    out = w2.shape[1]
    bm = min(m, block_rows)
    if bm == m and m >= 16:
        # Split into >= 2 row blocks so both v7x TensorCores get work; round to
        # a sublane multiple (Pallas masks the partial last block).
        bm = ((m + 1) // 2 + 7) // 8 * 8
    return pl.pallas_call(
        functools.partial(mlp2_kernel, cd=compute_dtype),
        out_shape=jax.ShapeDtypeStruct((m, out), jnp.float32),
        grid=(pl.cdiv(m, bm),),
        in_specs=[
            pl.BlockSpec((bm, kin), lambda i: (i, 0)),
            pl.BlockSpec((kin, hid), lambda i: (0, 0)),
            pl.BlockSpec((1, hid), lambda i: (0, 0)),
            pl.BlockSpec((hid, out), lambda i: (0, 0)),
            pl.BlockSpec((1, out), lambda i: (0, 0)),
        ],
        out_specs=pl.BlockSpec((bm, out), lambda i: (i, 0)),
        compiler_params=pltpu.CompilerParams(dimension_semantics=("parallel",)),
    )(x, w1, b1, w2, b2)


# ------------------- fused transformer stack (all layers) ------------------- #

def idpgan_stack_kernel(s_ref, e_ref, pe_ref, wqkv_ref, wo_ref, w1s_ref,
                        w1e_ref, w2_ref, w2d_ref, vec_ref, o_ref,
                        *, nhead, head_dim, scale, eps, cd):
    """Grid = (batch_block, layer). Activation lives in o_ref across layers."""
    layer = pl.program_id(1)
    bn, l, e = o_ref.shape
    e1 = e_ref.shape[-1]
    f = w2_ref.shape[1]
    p1 = pe_ref.shape[-1]
    d = nhead * head_dim

    @pl.when(layer == 0)
    def _():
        o_ref[...] = s_ref[...]

    s = o_ref[...].reshape(bn * l, e)                    # f32 resident activation
    e_aa = e_ref[...].reshape(bn * l, e1)                # compute dtype

    # Per-layer positional bias on the MXU from the resident (L, L, P+1) block
    # and the tiny per-layer (P+1, H) weight: replaces the (NL, H, L, L) HBM
    # tensor that was re-DMA'd every grid step.
    pe_flat = pe_ref[...].reshape(l * l, p1)
    bias3 = jnp.dot(pe_flat, w2d_ref[0],
                    preferred_element_type=jnp.float32).reshape(l, l, nhead)

    # Q/K/V projections (three separate matmuls; D may be < 128 so a fused
    # (E, 3D) weight would force misaligned lane slices).
    w3 = wqkv_ref[0]                                     # (3, E, D)
    s_c = s.astype(cd)
    q = (jnp.dot(s_c, w3[0], preferred_element_type=jnp.float32)
         * scale).astype(cd).reshape(bn, l, d)
    k = jnp.dot(s_c, w3[1],
                preferred_element_type=jnp.float32).astype(cd).reshape(bn, l, d)
    v = jnp.dot(s_c, w3[2],
                preferred_element_type=jnp.float32).astype(cd).reshape(bn, l, d)

    # Per-head attention; head outputs stay in registers, concatenated once.
    # TODO(synk): for large L, tile the key axis with an online-softmax carry
    # (flash-style) so live logits are (tq, tk) instead of (bn, L, L).
    heads = []
    for h in range(nhead):
        hs = slice(h * head_dim, (h + 1) * head_dim)
        logits = jnp.einsum('bld,bmd->blm', q[:, :, hs], k[:, :, hs],
                            preferred_element_type=jnp.float32)   # (BN, L, L)
        logits = logits + bias3[:, :, h][None]
        m = jnp.max(logits, axis=-1, keepdims=True)
        p = jnp.exp(logits - m)
        denom = jnp.sum(p, axis=-1, keepdims=True)
        attn = p * pl.reciprocal(denom, approx=True)
        heads.append(jnp.einsum('blm,bmd->bld', attn.astype(cd), v[:, :, hs],
                                preferred_element_type=jnp.float32))
    ctx = jnp.concatenate(heads, axis=-1).reshape(bn * l, d)

    # Packed per-layer bias / layernorm vectors (one DMA instead of seven).
    vec = vec_ref[0]                                     # (8, max(E, F)) f32
    bo, g1, be1 = vec[0:1, :e], vec[1:2, :e], vec[2:3, :e]
    b1 = vec[3:4, :f]
    b2, g2, be2 = vec[4:5, :e], vec[5:6, :e], vec[6:7, :e]

    # out_linear + residual + norm1 (dropout == identity, eval mode).
    s2 = jnp.dot(ctx.astype(cd), wo_ref[0],
                 preferred_element_type=jnp.float32) + bo
    s = _layernorm(s + s2, g1, be1, eps)

    # Update module on cat([s, e_aa]) via split weights (no lane concat).
    hid = (jnp.dot(s.astype(cd), w1s_ref[0], preferred_element_type=jnp.float32)
           + jnp.dot(e_aa, w1e_ref[0], preferred_element_type=jnp.float32)
           + b1)
    hid = jnp.maximum(hid, 0.0)
    s2 = jnp.dot(hid.astype(cd), w2_ref[0],
                 preferred_element_type=jnp.float32) + b2
    s = _layernorm(s + s2, g2, be2, eps)
    o_ref[...] = s.reshape(bn, l, e)


def idpgan_transformer(s, e_aa, pe_aug, sp, *, nhead, head_dim, scale, eps,
                       bn, compute_dtype, vmem_limit):
    n, l, e = s.shape
    e1 = e_aa.shape[-1]
    p1 = pe_aug.shape[-1]
    num_layers = sp['wo'].shape[0]
    d = sp['wo'].shape[1]
    f = sp['w2'].shape[1]
    vmax = sp['vecs'].shape[-1]

    kern = functools.partial(idpgan_stack_kernel, nhead=nhead,
                             head_dim=head_dim, scale=scale, eps=eps,
                             cd=compute_dtype)
    # TODO(synk): on v6e (128 MiB VMEM) consider pipeline_mode=pl.Buffered(3)
    # on the per-layer weight specs once bn is grown further.
    return pl.pallas_call(
        kern,
        out_shape=jax.ShapeDtypeStruct((n, l, e), jnp.float32),
        grid=(n // bn, num_layers),
        in_specs=[
            pl.BlockSpec((bn, l, e), lambda b, li: (b, 0, 0)),        # s (layer 0)
            pl.BlockSpec((bn, l, e1), lambda b, li: (b, 0, 0)),       # e_aa
            pl.BlockSpec((l, l, p1), lambda b, li: (0, 0, 0)),        # pe_aug (resident)
            pl.BlockSpec((1, 3, e, d), lambda b, li: (li, 0, 0, 0)),  # Wq/Wk/Wv
            pl.BlockSpec((1, d, e), lambda b, li: (li, 0, 0)),        # Wo
            pl.BlockSpec((1, e, f), lambda b, li: (li, 0, 0)),        # W1 (s part)
            pl.BlockSpec((1, e1, f), lambda b, li: (li, 0, 0)),       # W1 (e_aa part)
            pl.BlockSpec((1, f, e), lambda b, li: (li, 0, 0)),        # W2
            pl.BlockSpec((1, p1, nhead), lambda b, li: (li, 0, 0)),   # W2d^T (+bias)
            pl.BlockSpec((1, 8, vmax), lambda b, li: (li, 0, 0)),     # packed vectors
        ],
        out_specs=pl.BlockSpec((bn, l, e), lambda b, li: (b, 0, 0)),
        compiler_params=pltpu.CompilerParams(
            dimension_semantics=("parallel", "arbitrary"),
            vmem_limit_bytes=vmem_limit),
    )(s, e_aa, pe_aug, sp['wqkv'], sp['wo'], sp['w1s'], sp['w1e'],
      sp['w2'], sp['w2dT'], sp['vecs'])


# ----------------------- fused mlp_3d + distance map ------------------------ #

def mlp3d_dmap_kernel(h_ref, w1_ref, b1_ref, w2_ref, b2_ref, d_ref, *, eps, cd):
    bn, l, e = h_ref.shape
    h = h_ref[...].reshape(bn * l, e).astype(cd)
    t = jnp.maximum(
        jnp.dot(h, w1_ref[...].astype(cd),
                preferred_element_type=jnp.float32) + b1_ref[...], 0.0)
    r = (jnp.dot(t.astype(cd), w2_ref[...].astype(cd),
                 preferred_element_type=jnp.float32)
         + b2_ref[...]).reshape(bn, l, 3)
    # Pairwise distances on the MXU (kept f32; contraction dim is only 3):
    #   d^2 = |ri|^2 + |rj|^2 - 2 ri.rj, clamped at 0.
    # TODO(synk): the Gram-based d^2 loses precision for near-coincident points
    # relative to the diff-based formula (covered by the test tolerance).
    g = jnp.einsum('bld,bmd->blm', r, r, preferred_element_type=jnp.float32)
    rr = r * r
    sq_col = jnp.sum(rr, axis=-1, keepdims=True)                       # (BN, L, 1)
    sq_row = jnp.einsum('bod,bmd->bom', jnp.ones((bn, 1, 3), r.dtype), rr,
                        preferred_element_type=jnp.float32)            # (BN, 1, L)
    d2 = sq_col + sq_row - 2.0 * g
    d_ref[...] = jnp.sqrt(jnp.maximum(d2, 0.0) + eps)


def mlp3d_dmap(h, m3, *, bn, eps, compute_dtype, vmem_limit):
    n, l, e = h.shape
    f = m3['w1'].shape[1]
    return pl.pallas_call(
        functools.partial(mlp3d_dmap_kernel, eps=eps, cd=compute_dtype),
        out_shape=jax.ShapeDtypeStruct((n, l, l), jnp.float32),
        grid=(n // bn,),
        in_specs=[
            pl.BlockSpec((bn, l, e), lambda b: (b, 0, 0)),
            pl.BlockSpec((e, f), lambda b: (0, 0)),
            pl.BlockSpec((1, f), lambda b: (0, 0)),
            pl.BlockSpec((f, 3), lambda b: (0, 0)),
            pl.BlockSpec((1, 3), lambda b: (0, 0)),
        ],
        out_specs=pl.BlockSpec((bn, l, l), lambda b: (b, 0, 0)),
        compiler_params=pltpu.CompilerParams(
            dimension_semantics=("parallel",),
            vmem_limit_bytes=vmem_limit),
    )(h, m3['w1'], m3['b1'], m3['w2'], m3['b2'])


# ----------------------------- full forward -------------------------------- #

def _positional_bias_input(params, cfg, l):
    pos = jnp.arange(l)
    rel = (pos[None, :] - pos[:, None]).astype(jnp.float32)
    ml = cfg['pe_max_l']
    bins = jnp.linspace(-float(ml), float(ml), 2 * ml + 1)
    # TODO(synk): gather / argmin binning kept in plain JAX (no clean Pallas gather).
    bidx = jnp.argmin(jnp.abs(bins[None, None, :] - rel[:, :, None]), axis=-1)
    pe = jnp.take(params['embed_pos'], bidx, axis=0)            # (L, L, P)
    ones = jnp.ones((l, l, 1), pe.dtype)
    return jnp.concatenate([pe, ones], axis=-1)                 # (L, L, P+1)


def _stack_layer_params(layers, e, f, cd):
    def st(key, dtype=None):
        t = jnp.stack([lp[key] for lp in layers], axis=0)
        return t.astype(dtype) if dtype is not None else t

    wqkv = jnp.stack(
        [jnp.stack([lp['wq'], lp['wk'], lp['wv']], axis=0) for lp in layers],
        axis=0).astype(cd)                                      # (NL, 3, E, D)
    w1s = jnp.stack([lp['w1'][:e] for lp in layers], axis=0).astype(cd)
    w1e = jnp.stack([lp['w1'][e:] for lp in layers], axis=0).astype(cd)
    w2dT = jnp.stack([lp['w2d_aug'].T for lp in layers], axis=0).astype(cd)

    vmax = max(e, f)

    def padv(v):
        v = v.reshape(-1)
        return jnp.pad(v, (0, vmax - v.shape[0]))

    vecs = jnp.stack([
        jnp.stack([padv(lp['bo']), padv(lp['g1']), padv(lp['be1']),
                   padv(lp['b1']), padv(lp['b2']), padv(lp['g2']),
                   padv(lp['be2']), jnp.zeros((vmax,), jnp.float32)], axis=0)
        for lp in layers], axis=0)                              # (NL, 8, Vmax) f32

    return dict(wqkv=wqkv, wo=st('wo', cd), w1s=w1s, w1e=w1e, w2=st('w2', cd),
                w2dT=w2dT, vecs=vecs)


def idpgan_forward(params, cfg, z, x, get_coords=False,
                   compute_dtype=jnp.float32):
    n, nz, l = z.shape
    e = cfg['embed_dim']
    f = cfg['dim_feedforward']
    cd = compute_dtype
    aa_idx = jnp.argmax(x, axis=1)                              # (N, L)
    e_aa = jnp.take(params['embed_aa'], aa_idx, axis=0).astype(cd)   # (N, L, E1)

    # embed_x MLP (Pallas, row-tiled).
    # TODO(synk): could be folded into the transformer's layer-0 pl.when to
    # save one HBM round trip of h.
    h = jnp.transpose(z, (0, 2, 1)).reshape(n * l, nz)
    ex = params['embed_x']
    h = mlp2(h, ex['w1'], ex['b1'], ex['w2'], ex['b2'],
             compute_dtype=cd).reshape(n, l, e)

    pe_aug = _positional_bias_input(params, cfg, l).astype(cd)  # (L, L, P+1)
    sp = _stack_layer_params(params['layers'], e, f, cd)

    scale = 1.0 / math.sqrt(cfg['d_model'])     # dp_attn_norm='d_model'
    head_dim = cfg['d_model'] // cfg['nhead']
    vmem_limit = _vmem_limit_bytes()
    bn = _choose_batch_block(n, l, e, e_aa.shape[-1], cfg['d_model'], f,
                             pe_aug.shape[-1], cfg['nhead'],
                             jnp.dtype(cd).itemsize, vmem_limit)
    h = idpgan_transformer(h, e_aa, pe_aug, sp, nhead=cfg['nhead'],
                           head_dim=head_dim, scale=scale, eps=cfg['ln_eps'],
                           bn=bn, compute_dtype=cd, vmem_limit=vmem_limit)

    m3 = params['mlp_3d']
    if get_coords:
        r = mlp2(h.reshape(n * l, e), m3['w1'], m3['b1'], m3['w2'], m3['b2'],
                 compute_dtype=cd)
        return r.reshape(n, l, 3)
    return mlp3d_dmap(h, m3, bn=bn, eps=1e-12, compute_dtype=cd,
                      vmem_limit=vmem_limit)                    # (N, L, L)


# --------------------------- pure-jnp reference ----------------------------- #

def _ref_block(s, e_aa, pe_aug, lp, nhead, head_dim, scale, eps):
    q = s @ lp['wq']
    k = s @ lp['wk']
    v = s @ lp['wv']
    outs = []
    for h in range(nhead):
        sl = slice(h * head_dim, (h + 1) * head_dim)
        logits = jnp.einsum('nld,nmd->nlm', q[..., sl] * scale, k[..., sl])
        ph = jnp.einsum('lmp,p->lm', pe_aug, lp['w2d_aug'][h])
        attn = jax.nn.softmax(logits + ph[None], axis=-1)
        outs.append(jnp.einsum('nlm,nmd->nld', attn, v[..., sl]))
    s2 = jnp.concatenate(outs, -1) @ lp['wo'] + lp['bo']
    s = _layernorm(s + s2, lp['g1'], lp['be1'], eps)
    um = jnp.concatenate([s, e_aa], -1)
    s2 = jnp.maximum(um @ lp['w1'] + lp['b1'], 0.0) @ lp['w2'] + lp['b2']
    return _layernorm(s + s2, lp['g2'], lp['be2'], eps)


def idpgan_forward_ref(params, cfg, z, x):
    n, nz, l = z.shape
    pe_aug = _positional_bias_input(params, cfg, l)
    e_aa = jnp.take(params['embed_aa'], jnp.argmax(x, axis=1), axis=0)
    h = jnp.transpose(z, (0, 2, 1))
    ex = params['embed_x']
    h = jnp.maximum(h @ ex['w1'] + ex['b1'], 0.0) @ ex['w2'] + ex['b2']
    scale = 1.0 / math.sqrt(cfg['d_model'])
    head_dim = cfg['d_model'] // cfg['nhead']
    for lp in params['layers']:
        h = _ref_block(h, e_aa, pe_aug, lp, cfg['nhead'], head_dim,
                       scale, cfg['ln_eps'])
    m3 = params['mlp_3d']
    r = jnp.maximum(h @ m3['w1'] + m3['b1'], 0.0) @ m3['w2'] + m3['b2']
    diff = r[:, None, :, :] - r[:, :, None, :]
    return jnp.sqrt(jnp.sum(diff * diff, axis=-1) + 1e-12)


# ----------------------------- parameter init ------------------------------- #

def init_params(key, cfg):
    E, D, H = cfg['embed_dim'], cfg['d_model'], cfg['nhead']
    F, E1, P = cfg['dim_feedforward'], cfg['embed_dim_1d'], cfg['pos_embed_dim']
    NZ, ML = cfg['nz'], cfg['pe_max_l']
    keys = iter(jax.random.split(key, 128))

    def w(shape, fan_in):
        return jax.random.normal(next(keys), shape, jnp.float32) / math.sqrt(fan_in)

    def b(shape):
        return jax.random.normal(next(keys), shape, jnp.float32) * 0.02

    params = {
        'embed_pos': jax.random.normal(next(keys), (2 * ML + 1, P), jnp.float32) * 0.1,
        'embed_aa': jax.random.normal(next(keys), (20, E1), jnp.float32) * 0.1,
        'embed_x': dict(w1=w((NZ, E), NZ), b1=b((1, E)),
                        w2=w((E, E), E), b2=b((1, E))),
        'mlp_3d': dict(w1=w((E, E), E), b1=b((1, E)),
                       w2=w((E, 3), E), b2=b((1, 3))),
    }
    layers = []
    for _ in range(cfg['num_layers']):
        w2d = w((H, P), P)
        b2d = b((H, 1))
        layers.append(dict(
            wq=w((E, D), E), wk=w((E, D), E), wv=w((E, D), E),
            wo=w((D, E), D), bo=b((1, E)),
            w2d_aug=jnp.concatenate([w2d, b2d], axis=1),        # (H, P+1)
            g1=jnp.ones((1, E), jnp.float32), be1=jnp.zeros((1, E), jnp.float32),
            w1=w((E + E1, F), E + E1), b1=b((1, F)),
            w2=w((F, E), F), b2=b((1, E)),
            g2=jnp.ones((1, E), jnp.float32), be2=jnp.zeros((1, E), jnp.float32),
        ))
    params['layers'] = layers
    return params


# --------------------------------- main ------------------------------------- #

if __name__ == "__main__":
    cfg = dict(nz=16, embed_dim=32, d_model=32, nhead=4, dim_feedforward=32,
               num_layers=2, embed_dim_1d=16, pos_embed_dim=16, pe_max_l=24,
               ln_eps=1e-5)
    key = jax.random.PRNGKey(0)
    kp, kz, kx = jax.random.split(key, 3)
    params = init_params(kp, cfg)

    N, L = 2, 8
    z = jax.random.normal(kz, (N, cfg['nz'], L), jnp.float32)          # (N, nz, L)
    aa = jax.random.randint(kx, (N, L), 0, 20)
    x = jax.nn.one_hot(aa, 20, axis=1, dtype=jnp.float32)              # (N, 20, L)

    d_ref = jax.block_until_ready(idpgan_forward_ref(params, cfg, z, x))

    # f32 path: parity with the pure-JAX reference (residual deviation comes
    # from pl.reciprocal(approx=True) in softmax and the Gram-based dmap).
    d32 = jax.block_until_ready(
        idpgan_forward(params, cfg, z, x, compute_dtype=jnp.float32))
    assert d32.shape == (N, L, L), d32.shape
    err32 = float(jnp.max(jnp.abs(d32 - d_ref)))
    assert err32 < 5e-2, f"f32 mismatch vs reference: {err32}"

    # bf16 matmul path (v6e/v7x fast path): scale-aware looser check.
    dbf = jax.block_until_ready(
        idpgan_forward(params, cfg, z, x, compute_dtype=jnp.bfloat16))
    errbf = float(jnp.max(jnp.abs(dbf - d_ref) / (jnp.abs(d_ref) + 1.0)))
    assert errbf < 1e-1, f"bf16 mismatch vs reference: {errbf}"

    print("KERNEL_OK")
</pallas_src>

<mosaic_0001>
module attributes {stable_mosaic.version = 11 : i64} {
  func.func @mlp2_kernel(%arg0: i32, %arg1: memref<8x16xf32, #tpu.memory_space<vmem>>, %arg2: memref<16x32xf32, #tpu.memory_space<vmem>>, %arg3: memref<1x32xf32, #tpu.memory_space<vmem>>, %arg4: memref<32x32xf32, #tpu.memory_space<vmem>>, %arg5: memref<1x32xf32, #tpu.memory_space<vmem>>, %arg6: memref<8x32xf32, #tpu.memory_space<vmem>>) attributes {dimension_semantics = [#tpu.dimension_semantics<parallel>], iteration_bounds = array<i64: 2>, scalar_prefetch = 0 : i64, scratch_operands = 0 : i64, tpu.core_type = #tpu.core_type<tc>, window_params = [{transform_indices = @transform_0, window_bounds = array<i64: 8, 16>}, {pipeline_mode = #tpu.pipeline_mode<synchronous>, transform_indices = @transform_1, window_bounds = array<i64: 16, 32>}, {pipeline_mode = #tpu.pipeline_mode<synchronous>, transform_indices = @transform_2, window_bounds = array<i64: 1, 32>}, {pipeline_mode = #tpu.pipeline_mode<synchronous>, transform_indices = @transform_3, window_bounds = array<i64: 32, 32>}, {pipeline_mode = #tpu.pipeline_mode<synchronous>, transform_indices = @transform_4, window_bounds = array<i64: 1, 32>}, {transform_indices = @transform_5, window_bounds = array<i64: 8, 32>}]} {
    %c0 = arith.constant 0 : index
    %c0_0 = arith.constant 0 : index
    %0 = vector.load %arg1[%c0, %c0_0] : memref<8x16xf32, #tpu.memory_space<vmem>>, vector<8x16xf32>
    %c0_1 = arith.constant 0 : index
    %c0_2 = arith.constant 0 : index
    %1 = vector.load %arg2[%c0_1, %c0_2] : memref<16x32xf32, #tpu.memory_space<vmem>>, vector<16x32xf32>
    %cst = arith.constant dense<0.000000e+00> : vector<8x32xf32>
    %2 = tpu.matmul %0, %1, %cst {dimension_numbers = #tpu.dot_dimension_numbers<[1], [0], [0], [1], [0, 0, 1, 1], [], []>} : vector<8x16xf32>, vector<16x32xf32>, vector<8x32xf32> -> vector<8x32xf32>
    %c0_3 = arith.constant 0 : index
    %c0_4 = arith.constant 0 : index
    %3 = vector.load %arg3[%c0_3, %c0_4] : memref<1x32xf32, #tpu.memory_space<vmem>>, vector<1x32xf32>
    %4 = vector.broadcast %3 : vector<1x32xf32> to vector<8x32xf32>
    %5 = arith.addf %2, %4 : vector<8x32xf32>
    %cst_5 = arith.constant 0.000000e+00 : f32
    %6 = vector.broadcast %cst_5 : f32 to vector<8x32xf32>
    %7 = arith.maximumf %5, %6 : vector<8x32xf32>
    %c0_6 = arith.constant 0 : index
    %c0_7 = arith.constant 0 : index
    %8 = vector.load %arg4[%c0_6, %c0_7] : memref<32x32xf32, #tpu.memory_space<vmem>>, vector<32x32xf32>
    %cst_8 = arith.constant dense<0.000000e+00> : vector<8x32xf32>
    %9 = tpu.matmul %7, %8, %cst_8 {dimension_numbers = #tpu.dot_dimension_numbers<[1], [0], [0], [1], [0, 0, 1, 1], [], []>} : vector<8x32xf32>, vector<32x32xf32>, vector<8x32xf32> -> vector<8x32xf32>
    %c0_9 = arith.constant 0 : index
    %c0_10 = arith.constant 0 : index
    %10 = vector.load %arg5[%c0_9, %c0_10] : memref<1x32xf32, #tpu.memory_space<vmem>>, vector<1x32xf32>
    %11 = vector.broadcast %10 : vector<1x32xf32> to vector<8x32xf32>
    %12 = arith.addf %9, %11 : vector<8x32xf32>
    %c0_11 = arith.constant 0 : index
    %c0_12 = arith.constant 0 : index
    %13 = vector.load %arg6[%c0_11, %c0_12] : memref<8x32xf32, #tpu.memory_space<vmem>>, vector<8x32xf32>
    tpu.vector_store %arg6[%c0_11, %c0_12], %12 {strides = array<i32>} : memref<8x32xf32, #tpu.memory_space<vmem>>, vector<8x32xf32>,
    return
  }
  func.func @transform_0(%arg0: i32) -> (i32, i32) {
    %c0_i32 = arith.constant 0 : i32
    %c0_i32_0 = arith.constant 0 : i32
    return %arg0, %c0_i32 : i32, i32
  }
  func.func @transform_1(%arg0: i32) -> (i32, i32) {
    %c0_i32 = arith.constant 0 : i32
    %c0_i32_0 = arith.constant 0 : i32
    %c0_i32_1 = arith.constant 0 : i32
    return %c0_i32, %c0_i32_0 : i32, i32
  }
  func.func @transform_2(%arg0: i32) -> (i32, i32) {
    %c0_i32 = arith.constant 0 : i32
    %c0_i32_0 = arith.constant 0 : i32
    %c0_i32_1 = arith.constant 0 : i32
    return %c0_i32, %c0_i32_0 : i32, i32
  }
  func.func @transform_3(%arg0: i32) -> (i32, i32) {
    %c0_i32 = arith.constant 0 : i32
    %c0_i32_0 = arith.constant 0 : i32
    %c0_i32_1 = arith.constant 0 : i32
    return %c0_i32, %c0_i32_0 : i32, i32
  }
  func.func @transform_4(%arg0: i32) -> (i32, i32) {
    %c0_i32 = arith.constant 0 : i32
    %c0_i32_0 = arith.constant 0 : i32
    %c0_i32_1 = arith.constant 0 : i32
    return %c0_i32, %c0_i32_0 : i32, i32
  }
  func.func @transform_5(%arg0: i32) -> (i32, i32) {
    %c0_i32 = arith.constant 0 : i32
    %c0_i32_0 = arith.constant 0 : i32
    return %arg0, %c0_i32 : i32, i32
  }
}

</mosaic_0001>

<bundles_post_ra>
// kernel: tpu_custom_call.1
= control target key start
LH: loop header
LB: loop body
LE: loop exit
PB: predicated region body
PF: predicated region fallthrough
CT: control target
= control target key end

     0   :  { %10 = vsyncpa [#allocation3], 0  ;;  %s885_s0 = inlined_call_operand.hbm [shape: f32[16,16], index: 0, kind: input, shape index: {}]   ;;  %s886_s1 = inlined_call_operand.hbm [shape: f32[16,32], index: 1, kind: input, shape index: {}]   ;;  %s887_s2 = inlined_call_operand.vmem [shape: f32[1,32], index: 2, kind: input, shape index: {}]   ;;  %s888_s3 = inlined_call_operand.hbm [shape: f32[32,32], index: 3, kind: input, shape index: {}]   ;;  %s889_s4 = inlined_call_operand.vmem [shape: f32[1,32], index: 4, kind: input, shape index: {}]   ;;  %s890_s5 = inlined_call_operand.hbm [shape: f32[16,32], index: 5, kind: output, shape index: {}]  }
   0x1   :  { %12 = vsyncpa [#allocation3 + $0x1], 0 }
   0x2   :  { %13 = vsyncpa [#allocation6], 0 }
   0x3   :  { %14 = vsyncpa [#allocation4], 0 }
   0x4   :  { %16 = vsyncpa [#allocation4 + $0x1], 0  ;;  %s730_s18 = smov 0   ;;  %s732_s19 = smov 0  }
   0x5   :  { %s734_s20 = smov 0   ;;  %s736_s21 = smov 0  }
   0x6 LB: > { %s174_s24 = sshll.u32 %s886_s1, 4  ;;  %s754_s25 = sadd.s32 4294967295, %s694_s21   ;;  %s694_s21 = sphi %s736_s21, %s901_s21   ;;  %s690_s20 = sphi %s734_s20, %s900_s20   ;;  %s686_s19 = sphi %s732_s19, %s899_s19   ;;  %s682_s18 = sphi %s730_s18, %s898_s18   ;;  %s175_s24 = int_to_ptr.hbm [resolvable:$true] %s174_s24 }
   0x7   : > { %p446_p0 = scmp.ge.s32.totalorder %s694_s21, 1  ;;  %p43_p1 = scmp.eq.s32.totalorder %s754_s25, 0 }
   0x8   : > { %p163_p2 = scmp.lt.s32.totalorder %s694_s21, 3  ;;  %s696_s27 = smov [#allocation5]  }
   0x9   : > { %s176_s28 = sshll.u32 %s696_s27, 4  ;;  %s191_s6 = sshll.u32 %s888_s3, 4  ;;  %s177_s28 = int_to_ptr.vmem [resolvable:$true] %s176_s28  ;;  %s192_s6 = int_to_ptr.hbm [resolvable:$true] %s191_s6 }
   0xa   : > { %p759_p3 = pnand %p446_p0, %p163_p2  ;;  %s697_s7 = smov [#allocation7]  }
   0xb   : > { %s193_s8 = sshll.u32 %s697_s7, 4  ;;  %s698_s9 = smov 128   ;;  %s194_s8 = int_to_ptr.vmem [resolvable:$true] %s193_s8 }
   0xc   : > { %p475_p4 = pneg %p759_p3  ;;  %s699_s10 = smov 8  }
   0xd   : > { %s445_s11 = sadd.s32 4294967294, %s694_s21   ;;  %s773_s12 = sadd.s32 1, %s694_s21  }
   0xe   : > { %p476_p6 = pnand %p475_p4, %p43_p1  ;;  %s26_s13 = ssub.s32 %s694_s21, %s773_s12 }
   0xf   : > { %s29_s14 = sadd.s32 1, %s690_s20  ;;  %p27_p7 = scmp.eq.s32.totalorder %s26_s13, 0 }
  0x10   : > { %478 = dma.hbm_to_vmem [thread:$0]  (!%p476_p6), %s175_s24, 256, %s177_s28, [#allocation6], %s698_s9, %s698_s9, %s699_s10  }
  0x11   : > { %481 = dma.hbm_to_vmem [thread:$0]  (!%p476_p6), %s192_s6, 512, %s194_s8, [#allocation6], %s698_s9, %s698_s9, %s699_s10  }
  0x12   : > { %p36_p8 = scmp.ne.s32.totalorder %s690_s20, %s686_s19  ;;  %p37_p9 = scmp.eq.s32.totalorder %s694_s21, 0 }
  0x13   : > { %p42_p10 = scmp.ne.s32.totalorder %s686_s19, %s682_s18  ;;  %p150_p13 = scmp.eq.s32.totalorder %s754_s25, 1 }
  0x14   : > { %s784_s15 = scalar_select %p27_p7, %s690_s20, %s29_s14  }
  0x15   : > { %p786_p11 = por %p37_p9, %p36_p8  ;;  %p792_p12 = por %p43_p1, %p42_p10 }
  0x16   : > { %p156_p0 = scmp.eq.s32.totalorder %s445_s11, 1  ;;  %p492_p2 = scmp.lt.s32.totalorder %s694_s21, 2 }
  0x17   : > { %s210_s22 = sand.u32 1, %s690_s20   ;;  %p799_p4 = por %p150_p13, %p36_p8 }
  0x18   : > { %p803_p6 = por %p156_p0, %p42_p10  ;;  %s450_s27 = sshll.u32 %s210_s22, 3 }
  0x19   : > { %s451_s28 = sshll.u32 %s694_s21, 3  ;;  %s214_s7 = scalar_lea.vmem [#allocation2], %s450_s27 }
  0x1a   : > { %s218_s6 = scalar_lea.hbm %s885_s0, %s451_s28  ;;  %s222_s8 = sshll.u32 %s214_s7, 4  ;;  %s223_s8 = int_to_ptr.vmem [resolvable:$true] %s222_s8 }
  0x1b   : > { %s220_s9 = sshll.u32 %s218_s6, 4  ;;  %p813_p7 = pnand %p492_p2, %p786_p11  ;;  %s221_s9 = int_to_ptr.hbm [resolvable:$true] %s220_s9 }
  0x1c   : > { %s211_s11 = scalar_lea.sflag [#allocation3], %s210_s22  ;;  %s594_s13 = sshra.s32 %s221_s9, 4  ;;  %s595_s13 = int_to_ptr.hbm [resolvable:$true] %s594_s13 }
  0x1d   : > { %s596_s14 = scalar_lea.hbm %s595_s13, 8  ;;  %p598_p9 = pneg %p813_p7 }
  0x1e   : > { %p597_p8 = scmp.ne.s32.totalorder %s595_s13, %s596_s14  ;;  %s601_s29 = scalar_lea.hbm %s885_s0, 16 }
  0x1f   : > { %p602_p11 = scmp.lt.s32.totalorder %s595_s13, %s885_s0  ;;  %p603_p0 = scmp.lt.s32.totalorder %s601_s29, %s596_s14 }
  0x20   : > { %p599_p10 = pnand %p598_p9, %p597_p8 }
  0x21   : > { %p604_p2 = por %p603_p0, %p602_p11 }
  0x22   : > { %p600_p13 = pneg %p599_p10 }
  0x24   : > { %p605_p5 = pnand %p604_p2, %p600_p13 }
  0x26   : > { %608 = shalt.err (!%p605_p5)
}
  0x27   : > { %485 = dma.hbm_to_vmem [thread:$0]  (!%p813_p7), %s221_s9, 128, %s223_s8, %s211_s11  }
  0x28   : > { %231 = sbr.rel (%p759_p3) target bundleno = 313 (0x139), region = 40  ;;  %s830_s22 = sand.u32 (!%p759_p3), 1, %s686_s19  }
  0x29   : > { %s453_s6 = sshll.u32 (!%p759_p3), %s830_s22, 3  ;;  %s234_s7 = scalar_lea.sflag (!%p759_p3), [#allocation3], %s830_s22 }
  0x2a   : > { %s237_s13 = scalar_lea.vmem (!%p759_p3), [#allocation2], %s453_s6 }
  0x2d   : > { %669 = dma.done.wait (%p792_p12), %s234_s7, 128  }
  0x2e   : > { %671 = vsyncadd (%p792_p12), %s234_s7, 4294967168 }
  0x2f   : > { %673 = dma.done.wait (%p43_p1), [#allocation6], 768  }
  0x30   : > { %675 = vsyncadd (%p43_p1), [#allocation6], 4294966528  ;;  %v277_v0 = vld [vmem:[#allocation5 + $0x8] sm:$0xff]  ;;  %v276_v1 = vld [vmem:[#allocation5] sm:$0xff]  ;;  %vm282_vm0 = vcmask 130048   ;;  %vm315_vm1 = vcmask 261120  }
  0x31   : > { %300 = vmatpush.msra.mxu0 %v277_v0  ;;  %v275_v2 = vld [vmem:[%s237_s13] sm:$0xff]  ;;  %v310_v3 = vld [vmem:[#allocation7 + $0x18] sm:$0xff]  ;;  %v309_v4 = vld [vmem:[#allocation7 + $0x10] sm:$0xff]  ;;  %s460_s8 = sshll.u32 %s754_s25, 3  ;;  %s274_s28 = scalar_lea.vmem [#allocation8], %s453_s6 }
  0x32   : > { %331 = vmatpush.msra.mxu1 %v310_v3  ;;  %v308_v5 = vld [vmem:[#allocation7 + $0x8] sm:$0xff]  ;;  %v307_v6 = vld [vmem:[#allocation7] sm:$0xff]  ;;  %s351_s11 = scalar_lea.hbm %s890_s5, %s460_s8  ;;  %s353_s29 = sshll.u32 %s274_s28, 4  ;;  %s354_s29 = int_to_ptr.vmem [resolvable:$true] %s353_s29 }
  0x33   : > { %301 = vmatpush.msra.mxu0 %v276_v1  ;;  %v532_v7 = vld [vmem:[%s887_s2] ss:$0 sm:$0xff]  ;;  %s355_s30 = sshll.u32 %s351_s11, 4  ;;  %s341_s16 = scalar_lea.sflag [#allocation4], %s830_s22  ;;  %s356_s30 = int_to_ptr.hbm [resolvable:$true] %s355_s30 }
  0x34   : > { %457 = vmatmul.msk.f32.vlgmr.msra.gmra.mxu0 %vm282_vm0, %v275_v2  ;;  %332 = vmatpush.msra.mxu1 %v309_v4  ;;  %v533_v11 = vld [vmem:[%s889_s4] ss:$0 sm:$0xff]  ;;  %s638_s25 = sshra.s32 %s356_s30, 4  ;;  %s644_s17 = scalar_lea.hbm %s890_s5, 16  ;;  %s639_s25 = int_to_ptr.hbm [resolvable:$true] %s638_s25 }
  0x35   : > { %s640_s7 = scalar_lea.hbm %s639_s25, 8  ;;  %p645_p12 = scmp.lt.s32.totalorder %s639_s25, %s890_s5 }
  0x36   : > { %333 = vmatpush.msra.mxu1 %v308_v5  ;;  %p641_p1 = scmp.ne.s32.totalorder %s639_s25, %s640_s7  ;;  %p646_p7 = scmp.lt.s32.totalorder %s644_s17, %s640_s7 }
  0x38   : > { %334 = vmatpush.msra.mxu1 %v307_v6  ;;  %p642_p3 = pnand %p641_p1, %p799_p4  ;;  %p647_p8 = por %p646_p7, %p645_p12 }
  0x3a   : > { %p643_p5 = pneg %p642_p3 }
  0x3c   : > { %p648_p9 = pnand %p647_p8, %p643_p5 }
  0xb1   : > { %v303_v8 = vpop.f32.mrf.mxu0 }
  0xb2   : > { %v304_v9 = vadd.f32 %v532_v7, %v303_v8 }
  0xb4   : > { %v306_v10 = vmax.f32 %v304_v9, 0.0 }
  0xb6   : > { %458 = vmatmul.msk.f32.vlgmr.msra.gmra.mxu1 %vm315_vm1, %v306_v10 }
 0x133   : > { %v336_v12 = vpop.f32.mrf.mxu1 }
 0x134   : > { %v337_v13 = vadd.f32 %v533_v11, %v336_v12 }
 0x136   : > { %339 = vst.msk [vmem:[%s274_s28] sm:$0xff] %vm315_vm1, %v337_v13 }
 0x137   : > { %651 = shalt.err (!%p648_p9)
}
 0x138   : > { %473 = dma.vmem_to_hbm [thread:$0]  (%p799_p4), %s354_s29, 128, %s356_s30, %s341_s16  }
 0x139 PF: > { %s367_s22 = sand.u32 1, %s682_s18   ;;  %p897_p10 = scmp.ge.s32.totalorder %s694_s21, 2 }
 0x13a   : > { %s368_s9 = scalar_lea.sflag [#allocation4], %s367_s22 }
 0x13b   : > { %p487_p13 = pnand %p897_p10, %p803_p6 }
 0x13d   : > { %p488_p11 = pneg %p487_p13 }
 0x13f   : > { %677 = dma.done.wait (%p488_p11), %s368_s9, 128  }
 0x140   : > { %679 = vsyncadd (%p488_p11), %s368_s9, 4294967168  ;;  %p19_p0 = scmp.ge.s32.totalorder %s773_s12, 4   ;;  %s898_s18 = smov %s686_s19 }
 0x141   : > { %s899_s19 = smov %s690_s20  ;;  %s900_s20 = smov %s784_s15 }
 0x142   : > { %s901_s21 = smov %s773_s12  ;;  %21 = sbr.rel (!%p19_p0) target bundleno = 6 (0x6), region = 93 }
 0x147   :  { %374 = vsyncpa [#allocation3], 1 }
 0x148   :  { %376 = vsyncpa [#allocation3 + $0x1], 1 }
 0x149   :  { %377 = vsyncpa [#allocation6], 1 }
 0x14a   :  { %378 = vsyncpa [#allocation4], 1 }
 0x14b   :  { %380 = vsyncpa [#allocation4 + $0x1], 1 }

</bundles_post_ra>
